<compile_context>
chip_gen: v6e
topology: v6e:2x2x1
jax: 0.10.0
libtpu: 0.0.40
codegen_flags: <defaults>
</compile_context>

<pallas_src>
import functools

import jax
import jax.numpy as jnp
from jax.experimental import pallas as pl
from jax.experimental.pallas import tpu as pltpu

IN_DIM = 10
HIDDEN = 100
OUT_DIM = 4
BN_EPS = 1e-5

# Padded sizes.
IN_PAD = 16     # 10 features + ones column (folds b1) + pad
HID_PAD = 128   # hidden 100 -> 128 lanes
OUT_PAD = 8     # output 4 -> 8 lanes (sliced back to 4 in the wrapper)

H_CACHE_LIMIT_BYTES = 24 << 20   # v7x-safe cap for the VMEM h-cache


def _round_up(x, m):
    return (x + m - 1) // m * m


def fizzbuzz_kernel(nrows_ref, x_ref, w1_ref, w2_ref, prm_ref, b2_ref,
                    out_ref,
                    sum_ref, sumsq_ref, h_cache_ref, w2f_ref, b2f_ref,
                    *, use_h_cache):
    """grid = (phase, batch_tile).

    phase 0: h = relu(x @ w1aug); cache h; accumulate per-feature sum / sumsq;
             on the last tile fold BN into Linear #2 (w2f, b2f).
    phase 1: out = h @ w2f + b2f  (h from the VMEM cache, or recomputed).
    """
    phase = pl.program_id(0)
    j = pl.program_id(1)
    last_j = pl.num_programs(1) - 1

    @pl.when(jnp.logical_and(phase == 0, j == 0))
    def _init():
        sum_ref[...] = jnp.zeros_like(sum_ref)
        sumsq_ref[...] = jnp.zeros_like(sumsq_ref)

    @pl.when(phase == 0)
    def _stats():
        h = jnp.maximum(
            jnp.dot(x_ref[...], w1_ref[...],
                    preferred_element_type=jnp.float32), 0.0)
        if use_h_cache:
            h_cache_ref[j] = h
        sum_ref[...] += jnp.sum(h, axis=0, keepdims=True)
        sumsq_ref[...] += jnp.sum(h * h, axis=0, keepdims=True)

    @pl.when(jnp.logical_and(phase == 0, j == last_j))
    def _fold_bn_into_linear2():
        n_rows = nrows_ref[0].astype(jnp.float32)
        gamma = prm_ref[0:1, :]                           # [1, HID_PAD]
        beta = prm_ref[1:2, :]                            # [1, HID_PAD]
        mean = sum_ref[...] / n_rows
        var = sumsq_ref[...] / n_rows - mean * mean       # biased variance
        inv_std = jax.lax.rsqrt(var + BN_EPS)
        scale = gamma * inv_std                           # [1, HID_PAD]
        shift = beta - mean * scale                       # [1, HID_PAD]
        # One-time row-scale of w2 via a diag matmul (w2 is only [128, 8]).
        rows = jax.lax.broadcasted_iota(jnp.int32, (HID_PAD, HID_PAD), 0)
        cols = jax.lax.broadcasted_iota(jnp.int32, (HID_PAD, HID_PAD), 1)
        diag_scale = jnp.where(rows == cols, scale, 0.0)
        w2f_ref[...] = jnp.dot(diag_scale, w2_ref[...],
                               preferred_element_type=jnp.float32)
        b2f_ref[...] = (jnp.dot(shift, w2_ref[...],
                                preferred_element_type=jnp.float32)
                        + b2_ref[...])

    @pl.when(phase == 1)
    def _emit():
        if use_h_cache:
            h = h_cache_ref[j]
        else:
            h = jnp.maximum(
                jnp.dot(x_ref[...], w1_ref[...],
                        preferred_element_type=jnp.float32), 0.0)
        out_ref[...] = (
            jnp.dot(h, w2f_ref[...], preferred_element_type=jnp.float32)
            + b2f_ref[...]).astype(out_ref.dtype)


def fizzbuzz_forward(x, w1, b1, gamma, beta, w2, b2, *, tile_b=2048):
    """x: [B, 10] float32 -> [B, 4] float32 (training-mode BatchNorm)."""
    B = x.shape[0]
    tile_b = min(tile_b, _round_up(B, 8))          # sublane-aligned batch tile
    b_pad = _round_up(B, tile_b)
    nb = b_pad // tile_b

    # --- wrapper-side layout plumbing ---------------------------------------
    # x padded to 16 lanes; column IN_DIM holds 1.0 so b1 folds into w1.
    # Zero-padded batch rows have no ones column -> contribute 0 to BN stats.
    x_aug = jnp.zeros((b_pad, IN_PAD), jnp.float32)
    x_aug = x_aug.at[:B, :IN_DIM].set(x.astype(jnp.float32))
    x_aug = x_aug.at[:B, IN_DIM].set(1.0)

    w1_aug = jnp.zeros((IN_PAD, HID_PAD), jnp.float32)
    w1_aug = w1_aug.at[:IN_DIM, :HIDDEN].set(w1)
    w1_aug = w1_aug.at[IN_DIM, :HIDDEN].set(b1.reshape(-1))

    w2_pad = jnp.zeros((HID_PAD, OUT_PAD), jnp.float32)
    w2_pad = w2_pad.at[:HIDDEN, :OUT_DIM].set(w2)

    prm = jnp.zeros((8, HID_PAD), jnp.float32)           # gamma / beta tile
    prm = prm.at[0, :HIDDEN].set(gamma.reshape(-1))
    prm = prm.at[1, :HIDDEN].set(beta.reshape(-1))

    b2_pad = jnp.zeros((1, OUT_PAD), jnp.float32)
    b2_pad = b2_pad.at[0, :OUT_DIM].set(b2.reshape(-1))

    nrows = jnp.array([B], jnp.int32)                    # SMEM scalar prefetch

    # h-cache: phase 0 writes relu(x@w1) per tile, phase 1 reuses it.
    h_cache_bytes = nb * tile_b * HID_PAD * 4
    use_h_cache = h_cache_bytes <= H_CACHE_LIMIT_BYTES
    if use_h_cache:
        x_index_map = lambda p, j, nr: (j * (1 - p), 0)  # no x DMA in phase 1
        h_cache_shape = (nb, tile_b, HID_PAD)
    else:
        x_index_map = lambda p, j, nr: (j, 0)            # recompute path
        h_cache_shape = (1, 8, HID_PAD)                  # unused dummy

    # VMEM budget: double-buffered x/out tiles + resident weights + scratch.
    vmem_bytes = (
        2 * tile_b * (IN_PAD + OUT_PAD) * 4
        + 2 * (IN_PAD * HID_PAD + HID_PAD * OUT_PAD + 8 * HID_PAD + 8 * OUT_PAD) * 4
        + (2 * 8 * HID_PAD + HID_PAD * OUT_PAD + 8 * OUT_PAD) * 4
        + (h_cache_bytes if use_h_cache else 8 * 8 * HID_PAD * 4)
    )
    vmem_limit = int(min(max(vmem_bytes + (4 << 20), 16 << 20), 48 << 20))

    kernel = functools.partial(fizzbuzz_kernel, use_h_cache=use_h_cache)

    out_pad = pl.pallas_call(
        kernel,
        out_shape=jax.ShapeDtypeStruct((b_pad, OUT_PAD), jnp.float32),
        grid_spec=pltpu.PrefetchScalarGridSpec(
            num_scalar_prefetch=1,
            grid=(2, nb),                                   # (phase, batch tile)
            in_specs=[
                pl.BlockSpec((tile_b, IN_PAD), x_index_map),            # x tiles
                pl.BlockSpec((IN_PAD, HID_PAD), lambda p, j, nr: (0, 0)),   # resident
                pl.BlockSpec((HID_PAD, OUT_PAD), lambda p, j, nr: (0, 0)),  # resident
                pl.BlockSpec((8, HID_PAD), lambda p, j, nr: (0, 0)),        # resident
                pl.BlockSpec((1, OUT_PAD), lambda p, j, nr: (0, 0)),        # resident
            ],
            # Phase 0 keeps the output block index pinned at 0 (no garbage
            # writebacks); phase 1 walks the blocks and writes them once.
            out_specs=pl.BlockSpec((tile_b, OUT_PAD),
                                   lambda p, j, nr: (p * j, 0)),
            scratch_shapes=[
                pltpu.VMEM((1, HID_PAD), jnp.float32),        # sum
                pltpu.VMEM((1, HID_PAD), jnp.float32),        # sum of squares
                pltpu.VMEM(h_cache_shape, jnp.float32),       # h cache
                pltpu.VMEM((HID_PAD, OUT_PAD), jnp.float32),  # folded w2
                pltpu.VMEM((1, OUT_PAD), jnp.float32),        # folded bias
            ],
        ),
        compiler_params=pltpu.CompilerParams(
            # BN needs global batch statistics -> both axes run sequentially.
            dimension_semantics=("arbitrary", "arbitrary"),
            vmem_limit_bytes=vmem_limit,
        ),
    )(nrows, x_aug, w1_aug, w2_pad, prm, b2_pad)

    return out_pad[:B, :OUT_DIM]


def init_params(key):
    """Deterministic parameter init mimicking nn.Linear / nn.BatchNorm1d."""
    k1, k2, k3, k4 = jax.random.split(key, 4)
    lim1 = 1.0 / jnp.sqrt(jnp.float32(IN_DIM))
    w1 = jax.random.uniform(k1, (IN_DIM, HIDDEN), jnp.float32, -lim1, lim1)
    b1 = jax.random.uniform(k2, (1, HIDDEN), jnp.float32, -lim1, lim1)
    lim2 = 1.0 / jnp.sqrt(jnp.float32(HIDDEN))
    w2 = jax.random.uniform(k3, (HIDDEN, OUT_DIM), jnp.float32, -lim2, lim2)
    b2 = jax.random.uniform(k4, (1, OUT_DIM), jnp.float32, -lim2, lim2)
    gamma = jnp.ones((1, HIDDEN), jnp.float32)
    beta = jnp.zeros((1, HIDDEN), jnp.float32)
    return w1, b1, gamma, beta, w2, b2


def reference_forward(x, w1, b1, gamma, beta, w2, b2):
    a = x @ w1 + b1
    r = jnp.maximum(a, 0.0)
    mean = jnp.mean(r, axis=0, keepdims=True)
    var = jnp.mean((r - mean) ** 2, axis=0, keepdims=True)   # biased, training mode
    bn = (r - mean) * jax.lax.rsqrt(var + BN_EPS) * gamma + beta
    return bn @ w2 + b2


if __name__ == "__main__":
    key = jax.random.PRNGKey(0)
    kx, kx2, kp = jax.random.split(key, 3)

    params = init_params(kp)

    # Single-tile path.
    B = 8
    x = jax.random.normal(kx, (B, IN_DIM), jnp.float32)
    out = jax.block_until_ready(fizzbuzz_forward(x, *params))
    ref = reference_forward(x, *params)
    assert out.shape == (B, OUT_DIM)
    assert jnp.allclose(out, ref, atol=1e-4, rtol=1e-4), "mismatch vs reference (B=8)"

    # Multi-tile path (3 batch tiles + row padding, global BN stats).
    B2 = 20
    x2 = jax.random.normal(kx2, (B2, IN_DIM), jnp.float32)
    out2 = jax.block_until_ready(fizzbuzz_forward(x2, *params, tile_b=8))
    ref2 = reference_forward(x2, *params)
    assert out2.shape == (B2, OUT_DIM)
    assert jnp.allclose(out2, ref2, atol=1e-4, rtol=1e-4), "mismatch vs reference (B=20)"

    print("KERNEL_OK")
</pallas_src>

<mosaic_0001>
module attributes {stable_mosaic.version = 11 : i64} {
  func.func @fizzbuzz_kernel(%arg0: i32, %arg1: i32, %arg2: memref<1xi32, #tpu.memory_space<smem>>, %arg3: memref<8x16xf32, #tpu.memory_space<vmem>>, %arg4: memref<16x128xf32, #tpu.memory_space<vmem>>, %arg5: memref<128x8xf32, #tpu.memory_space<vmem>>, %arg6: memref<8x128xf32, #tpu.memory_space<vmem>>, %arg7: memref<1x8xf32, #tpu.memory_space<vmem>>, %arg8: memref<8x8xf32, #tpu.memory_space<vmem>>, %arg9: memref<1x128xf32, #tpu.memory_space<vmem>>, %arg10: memref<1x128xf32, #tpu.memory_space<vmem>>, %arg11: memref<1x8x128xf32, #tpu.memory_space<vmem>>, %arg12: memref<128x8xf32, #tpu.memory_space<vmem>>, %arg13: memref<1x8xf32, #tpu.memory_space<vmem>>) attributes {dimension_semantics = [#tpu.dimension_semantics<arbitrary>, #tpu.dimension_semantics<arbitrary>], iteration_bounds = array<i64: 2, 1>, scalar_prefetch = 1 : i64, scratch_operands = 5 : i64, tpu.core_type = #tpu.core_type<tc>, window_params = [{transform_indices = @transform_0, window_bounds = array<i64: 8, 16>}, {pipeline_mode = #tpu.pipeline_mode<synchronous>, transform_indices = @transform_1, window_bounds = array<i64: 16, 128>}, {pipeline_mode = #tpu.pipeline_mode<synchronous>, transform_indices = @transform_2, window_bounds = array<i64: 128, 8>}, {pipeline_mode = #tpu.pipeline_mode<synchronous>, transform_indices = @transform_3, window_bounds = array<i64: 8, 128>}, {pipeline_mode = #tpu.pipeline_mode<synchronous>, transform_indices = @transform_4, window_bounds = array<i64: 1, 8>}, {transform_indices = @transform_5, window_bounds = array<i64: 8, 8>}]} {
    %c0_i32 = arith.constant 0 : i32
    %0 = arith.cmpi eq, %arg0, %c0_i32 : i32
    %c0_i32_0 = arith.constant 0 : i32
    %1 = arith.cmpi eq, %arg1, %c0_i32_0 : i32
    %2 = arith.andi %0, %1 : i1
    %3 = arith.extui %2 : i1 to i32
    %c0_i32_1 = arith.constant 0 : i32
    %4 = arith.cmpi ne, %3, %c0_i32_1 : i32
    scf.if %4 {
      %cst = arith.constant 0.000000e+00 : f32
      %16 = vector.broadcast %cst : f32 to vector<1x128xf32>
      %c0 = arith.constant 0 : index
      %c0_8 = arith.constant 0 : index
      %17 = vector.load %arg9[%c0, %c0_8] : memref<1x128xf32, #tpu.memory_space<vmem>>, vector<1x128xf32>
      tpu.vector_store %arg9[%c0, %c0_8], %16 {strides = array<i32>} : memref<1x128xf32, #tpu.memory_space<vmem>>, vector<1x128xf32>,
      %cst_9 = arith.constant 0.000000e+00 : f32
      %18 = vector.broadcast %cst_9 : f32 to vector<1x128xf32>
      %c0_10 = arith.constant 0 : index
      %c0_11 = arith.constant 0 : index
      %19 = vector.load %arg10[%c0_10, %c0_11] : memref<1x128xf32, #tpu.memory_space<vmem>>, vector<1x128xf32>
      tpu.vector_store %arg10[%c0_10, %c0_11], %18 {strides = array<i32>} : memref<1x128xf32, #tpu.memory_space<vmem>>, vector<1x128xf32>,
    } else {
    }
    %c0_i32_2 = arith.constant 0 : i32
    %5 = arith.cmpi eq, %arg0, %c0_i32_2 : i32
    %6 = arith.extui %5 : i1 to i32
    %c0_i32_3 = arith.constant 0 : i32
    %7 = arith.cmpi ne, %6, %c0_i32_3 : i32
    scf.if %7 {
      %c0 = arith.constant 0 : index
      %c0_8 = arith.constant 0 : index
      %16 = vector.load %arg3[%c0, %c0_8] : memref<8x16xf32, #tpu.memory_space<vmem>>, vector<8x16xf32>
      %c0_9 = arith.constant 0 : index
      %c0_10 = arith.constant 0 : index
      %17 = vector.load %arg4[%c0_9, %c0_10] : memref<16x128xf32, #tpu.memory_space<vmem>>, vector<16x128xf32>
      %cst = arith.constant dense<0.000000e+00> : vector<8x128xf32>
      %18 = tpu.matmul %16, %17, %cst {dimension_numbers = #tpu.dot_dimension_numbers<[1], [0], [0], [1], [0, 0, 1, 1], [], []>} : vector<8x16xf32>, vector<16x128xf32>, vector<8x128xf32> -> vector<8x128xf32>
      %cst_11 = arith.constant 0.000000e+00 : f32
      %19 = vector.broadcast %cst_11 : f32 to vector<8x128xf32>
      %20 = arith.maximumf %18, %19 : vector<8x128xf32>
      %21 = arith.index_cast %arg1 : i32 to index
      %c0_12 = arith.constant 0 : index
      %c0_13 = arith.constant 0 : index
      %22 = vector.load %arg11[%21, %c0_12, %c0_13] : memref<1x8x128xf32, #tpu.memory_space<vmem>>, vector<1x8x128xf32>
      %23 = vector.shape_cast %22 : vector<1x8x128xf32> to vector<8x128xf32>
      %24 = vector.shape_cast %20 : vector<8x128xf32> to vector<1x8x128xf32>
      tpu.vector_store %arg11[%21, %c0_12, %c0_13], %24 {strides = array<i32>} : memref<1x8x128xf32, #tpu.memory_space<vmem>>, vector<1x8x128xf32>,
      %c0_14 = arith.constant 0 : index
      %c0_15 = arith.constant 0 : index
      %25 = vector.load %arg9[%c0_14, %c0_15] : memref<1x128xf32, #tpu.memory_space<vmem>>, vector<1x128xf32>
      %cst_16 = arith.constant dense<0.000000e+00> : vector<128xf32>
      %26 = vector.multi_reduction <add>, %20, %cst_16 [0] : vector<8x128xf32> to vector<128xf32>
      %27 = vector.shape_cast %26 : vector<128xf32> to vector<1x128xf32>
      %28 = arith.addf %25, %27 : vector<1x128xf32>
      %c0_17 = arith.constant 0 : index
      %c0_18 = arith.constant 0 : index
      %29 = vector.load %arg9[%c0_17, %c0_18] : memref<1x128xf32, #tpu.memory_space<vmem>>, vector<1x128xf32>
      tpu.vector_store %arg9[%c0_17, %c0_18], %28 {strides = array<i32>} : memref<1x128xf32, #tpu.memory_space<vmem>>, vector<1x128xf32>,
      %c0_19 = arith.constant 0 : index
      %c0_20 = arith.constant 0 : index
      %30 = vector.load %arg10[%c0_19, %c0_20] : memref<1x128xf32, #tpu.memory_space<vmem>>, vector<1x128xf32>
      %31 = arith.mulf %20, %20 : vector<8x128xf32>
      %cst_21 = arith.constant dense<0.000000e+00> : vector<128xf32>
      %32 = vector.multi_reduction <add>, %31, %cst_21 [0] : vector<8x128xf32> to vector<128xf32>
      %33 = vector.shape_cast %32 : vector<128xf32> to vector<1x128xf32>
      %34 = arith.addf %30, %33 : vector<1x128xf32>
      %c0_22 = arith.constant 0 : index
      %c0_23 = arith.constant 0 : index
      %35 = vector.load %arg10[%c0_22, %c0_23] : memref<1x128xf32, #tpu.memory_space<vmem>>, vector<1x128xf32>
      tpu.vector_store %arg10[%c0_22, %c0_23], %34 {strides = array<i32>} : memref<1x128xf32, #tpu.memory_space<vmem>>, vector<1x128xf32>,
    } else {
    }
    %c0_i32_4 = arith.constant 0 : i32
    %8 = arith.cmpi eq, %arg0, %c0_i32_4 : i32
    %c0_i32_5 = arith.constant 0 : i32
    %9 = arith.cmpi eq, %arg1, %c0_i32_5 : i32
    %10 = arith.andi %8, %9 : i1
    %11 = arith.extui %10 : i1 to i32
    %c0_i32_6 = arith.constant 0 : i32
    %12 = arith.cmpi ne, %11, %c0_i32_6 : i32
    scf.if %12 {
      %c0 = arith.constant 0 : index
      %16 = memref.load %arg2[%c0] : memref<1xi32, #tpu.memory_space<smem>>
      %17 = arith.sitofp %16 : i32 to f32
      %c0_8 = arith.constant 0 : index
      %c0_9 = arith.constant 0 : index
      %18 = vector.load %arg6[%c0_8, %c0_9] : memref<8x128xf32, #tpu.memory_space<vmem>>, vector<1x128xf32>
      %c1 = arith.constant 1 : index
      %c0_10 = arith.constant 0 : index
      %19 = vector.load %arg6[%c1, %c0_10] : memref<8x128xf32, #tpu.memory_space<vmem>>, vector<1x128xf32>
      %c0_11 = arith.constant 0 : index
      %c0_12 = arith.constant 0 : index
      %20 = vector.load %arg9[%c0_11, %c0_12] : memref<1x128xf32, #tpu.memory_space<vmem>>, vector<1x128xf32>
      %21 = vector.broadcast %17 : f32 to vector<1x128xf32>
      %22 = arith.divf %20, %21 : vector<1x128xf32>
      %c0_13 = arith.constant 0 : index
      %c0_14 = arith.constant 0 : index
      %23 = vector.load %arg10[%c0_13, %c0_14] : memref<1x128xf32, #tpu.memory_space<vmem>>, vector<1x128xf32>
      %24 = vector.broadcast %17 : f32 to vector<1x128xf32>
      %25 = arith.divf %23, %24 : vector<1x128xf32>
      %26 = arith.mulf %22, %22 : vector<1x128xf32>
      %27 = arith.subf %25, %26 : vector<1x128xf32>
      %cst = arith.constant 9.99999974E-6 : f32
      %28 = vector.broadcast %cst : f32 to vector<1x128xf32>
      %29 = arith.addf %27, %28 : vector<1x128xf32>
      %30 = math.rsqrt %29 : vector<1x128xf32>
      %31 = arith.mulf %18, %30 : vector<1x128xf32>
      %32 = arith.mulf %22, %31 : vector<1x128xf32>
      %33 = arith.subf %19, %32 : vector<1x128xf32>
      %34 = tpu.iota {dimensions = array<i32: 0>} : vector<128x128xi32>
      %35 = tpu.iota {dimensions = array<i32: 1>} : vector<128x128xi32>
      %36 = arith.cmpi eq, %34, %35 : vector<128x128xi32>
      %cst_15 = arith.constant 0.000000e+00 : f32
      %37 = vector.shape_cast %31 : vector<1x128xf32> to vector<1x128xf32>
      %38 = vector.broadcast %37 : vector<1x128xf32> to vector<128x128xf32>
      %39 = vector.broadcast %cst_15 : f32 to vector<128x128xf32>
      %40 = arith.select %36, %38, %39 : vector<128x128xi1>, vector<128x128xf32>
      %c0_16 = arith.constant 0 : index
      %c0_17 = arith.constant 0 : index
      %41 = vector.load %arg5[%c0_16, %c0_17] : memref<128x8xf32, #tpu.memory_space<vmem>>, vector<128x8xf32>
      %cst_18 = arith.constant dense<0.000000e+00> : vector<128x8xf32>
      %42 = tpu.matmul %40, %41, %cst_18 {dimension_numbers = #tpu.dot_dimension_numbers<[1], [0], [0], [1], [0, 0, 1, 1], [], []>} : vector<128x128xf32>, vector<128x8xf32>, vector<128x8xf32> -> vector<128x8xf32>
      %c0_19 = arith.constant 0 : index
      %c0_20 = arith.constant 0 : index
      %43 = vector.load %arg12[%c0_19, %c0_20] : memref<128x8xf32, #tpu.memory_space<vmem>>, vector<128x8xf32>
      tpu.vector_store %arg12[%c0_19, %c0_20], %42 {strides = array<i32>} : memref<128x8xf32, #tpu.memory_space<vmem>>, vector<128x8xf32>,
      %c0_21 = arith.constant 0 : index
      %c0_22 = arith.constant 0 : index
      %44 = vector.load %arg5[%c0_21, %c0_22] : memref<128x8xf32, #tpu.memory_space<vmem>>, vector<128x8xf32>
      %cst_23 = arith.constant dense<0.000000e+00> : vector<1x8xf32>
      %45 = tpu.matmul %33, %44, %cst_23 {dimension_numbers = #tpu.dot_dimension_numbers<[1], [0], [0], [1], [0, 0, 1, 1], [], []>} : vector<1x128xf32>, vector<128x8xf32>, vector<1x8xf32> -> vector<1x8xf32>
      %c0_24 = arith.constant 0 : index
      %c0_25 = arith.constant 0 : index
      %46 = vector.load %arg7[%c0_24, %c0_25] : memref<1x8xf32, #tpu.memory_space<vmem>>, vector<1x8xf32>
      %47 = arith.addf %45, %46 : vector<1x8xf32>
      %c0_26 = arith.constant 0 : index
      %c0_27 = arith.constant 0 : index
      %48 = vector.load %arg13[%c0_26, %c0_27] : memref<1x8xf32, #tpu.memory_space<vmem>>, vector<1x8xf32>
      tpu.vector_store %arg13[%c0_26, %c0_27], %47 {strides = array<i32>} : memref<1x8xf32, #tpu.memory_space<vmem>>, vector<1x8xf32>,
    } else {
    }
    %c1_i32 = arith.constant 1 : i32
    %13 = arith.cmpi eq, %arg0, %c1_i32 : i32
    %14 = arith.extui %13 : i1 to i32
    %c0_i32_7 = arith.constant 0 : i32
    %15 = arith.cmpi ne, %14, %c0_i32_7 : i32
    scf.if %15 {
      %16 = arith.index_cast %arg1 : i32 to index
      %c0 = arith.constant 0 : index
      %c0_8 = arith.constant 0 : index
      %17 = vector.load %arg11[%16, %c0, %c0_8] : memref<1x8x128xf32, #tpu.memory_space<vmem>>, vector<1x8x128xf32>
      %18 = vector.shape_cast %17 : vector<1x8x128xf32> to vector<8x128xf32>
      %c0_9 = arith.constant 0 : index
      %c0_10 = arith.constant 0 : index
      %19 = vector.load %arg12[%c0_9, %c0_10] : memref<128x8xf32, #tpu.memory_space<vmem>>, vector<128x8xf32>
      %cst = arith.constant dense<0.000000e+00> : vector<8x8xf32>
      %20 = tpu.matmul %18, %19, %cst {dimension_numbers = #tpu.dot_dimension_numbers<[1], [0], [0], [1], [0, 0, 1, 1], [], []>} : vector<8x128xf32>, vector<128x8xf32>, vector<8x8xf32> -> vector<8x8xf32>
      %c0_11 = arith.constant 0 : index
      %c0_12 = arith.constant 0 : index
      %21 = vector.load %arg13[%c0_11, %c0_12] : memref<1x8xf32, #tpu.memory_space<vmem>>, vector<1x8xf32>
      %22 = vector.broadcast %21 : vector<1x8xf32> to vector<8x8xf32>
      %23 = arith.addf %20, %22 : vector<8x8xf32>
      %c0_13 = arith.constant 0 : index
      %c0_14 = arith.constant 0 : index
      %24 = vector.load %arg8[%c0_13, %c0_14] : memref<8x8xf32, #tpu.memory_space<vmem>>, vector<8x8xf32>
      tpu.vector_store %arg8[%c0_13, %c0_14], %23 {strides = array<i32>} : memref<8x8xf32, #tpu.memory_space<vmem>>, vector<8x8xf32>,
    } else {
    }
    return
  }
  func.func @transform_0(%arg0: i32, %arg1: i32, %arg2: memref<1xi32, #tpu.memory_space<smem>>) -> (i32, i32) {
    %c1_i32 = arith.constant 1 : i32
    %0 = arith.subi %c1_i32, %arg0 : i32
    %1 = arith.muli %arg1, %0 : i32
    %c0_i32 = arith.constant 0 : i32
    %c0_i32_0 = arith.constant 0 : i32
    return %1, %c0_i32 : i32, i32
  }
  func.func @transform_1(%arg0: i32, %arg1: i32, %arg2: memref<1xi32, #tpu.memory_space<smem>>) -> (i32, i32) {
    %c0_i32 = arith.constant 0 : i32
    %c0_i32_0 = arith.constant 0 : i32
    %c0_i32_1 = arith.constant 0 : i32
    return %c0_i32, %c0_i32_0 : i32, i32
  }
  func.func @transform_2(%arg0: i32, %arg1: i32, %arg2: memref<1xi32, #tpu.memory_space<smem>>) -> (i32, i32) {
    %c0_i32 = arith.constant 0 : i32
    %c0_i32_0 = arith.constant 0 : i32
    %c0_i32_1 = arith.constant 0 : i32
    return %c0_i32, %c0_i32_0 : i32, i32
  }
  func.func @transform_3(%arg0: i32, %arg1: i32, %arg2: memref<1xi32, #tpu.memory_space<smem>>) -> (i32, i32) {
    %c0_i32 = arith.constant 0 : i32
    %c0_i32_0 = arith.constant 0 : i32
    %c0_i32_1 = arith.constant 0 : i32
    return %c0_i32, %c0_i32_0 : i32, i32
  }
  func.func @transform_4(%arg0: i32, %arg1: i32, %arg2: memref<1xi32, #tpu.memory_space<smem>>) -> (i32, i32) {
    %c0_i32 = arith.constant 0 : i32
    %c0_i32_0 = arith.constant 0 : i32
    %c0_i32_1 = arith.constant 0 : i32
    return %c0_i32, %c0_i32_0 : i32, i32
  }
  func.func @transform_5(%arg0: i32, %arg1: i32, %arg2: memref<1xi32, #tpu.memory_space<smem>>) -> (i32, i32) {
    %0 = arith.muli %arg0, %arg1 : i32
    %c0_i32 = arith.constant 0 : i32
    %c0_i32_0 = arith.constant 0 : i32
    return %0, %c0_i32 : i32, i32
  }
}

</mosaic_0001>

<bundles_post_ra>
// kernel: tpu_custom_call.1
= control target key start
LH: loop header
LB: loop body
LE: loop exit
PB: predicated region body
PF: predicated region fallthrough
CT: control target
= control target key end

     0   :  { %s1423_s0 = inlined_call_operand.<no memory space> [shape: s32[1], index: 0, kind: input, shape index: {}]   ;;  %s1424_s1 = inlined_call_operand.vmem [shape: f32[8,16], index: 1, kind: input, shape index: {}]   ;;  %s1425_s2 = inlined_call_operand.vmem [shape: f32[16,128], index: 2, kind: input, shape index: {}]   ;;  %s1426_s3 = inlined_call_operand.vmem [shape: f32[128,8], index: 3, kind: input, shape index: {}]   ;;  %s1427_s4 = inlined_call_operand.vmem [shape: f32[8,128], index: 4, kind: input, shape index: {}]   ;;  %s1428_s5 = inlined_call_operand.vmem [shape: f32[1,8], index: 5, kind: input, shape index: {}]   ;;  %s1429_s6 = inlined_call_operand.hbm [shape: f32[8,8], index: 6, kind: output, shape index: {}]  }
   0x1   :  { %11 = sst [smem:[#allocation8]] %s1423_s0 }
   0x2   :  { %12 = vsyncpa [#allocation10], 0 }
   0x3   :  { %14 = vsyncpa [#allocation10 + $0x1], 0  ;;  %s1270_s23 = smov 0   ;;  %s1272_s24 = smov 0  }
   0x4   :  { %s1274_s25 = smov 0  }
   0x5 LB: > { %s891_s0 = sadd.s32 4294967295, %s1222_s25   ;;  %s892_s26 = sadd.s32 4294967294, %s1222_s25   ;;  %s1222_s25 = sphi %s1274_s25, %s20_s25   ;;  %s1218_s24 = sphi %s1272_s24, %s1432_s24   ;;  %s1214_s23 = sphi %s1270_s23, %s1431_s23  }
   0x6   : > { %s32_s27 = sadd.s32 1, %s1218_s24  ;;  %p896_p0 = scmp.ge.s32.totalorder %s1222_s25, 1 }
   0x7   : > { %p34_p1 = scmp.ge.s32.totalorder %s32_s27, 2  ;;  %p213_p2 = scmp.lt.s32.totalorder %s1222_s25, 3 }
   0x9   : > { %s1434_s27 = smov (%p34_p1, %s32_s27), 0  ;;  %p214_p3 = pnand %p896_p0, %p213_p2 }
   0xa   : > { %p251_p4 = scmp.eq.s32.totalorder (!%p214_p3), %s1214_s23, 0 }
   0xb   : > { %217 = sbr.rel (%p214_p3) target bundleno = 768 (0x300), region = 40 }
  0x10   : > { %256 = sbr.rel (!%p251_p4) target bundleno = 21 (0x15), region = 44  ;;  %v1224_v0 = vmov (%p251_p4), 0.0  }
  0x11   : > { %257 = vst [vmem:[#allocation2] sm:$0x1] (%p251_p4), %v1224_v0  ;;  %258 = vst [vmem:[#allocation3] sm:$0x1] (%p251_p4), %v1224_v0 }
  0x15 PF: > { %p898_p5 = scmp.ne.s32.totalorder %s1214_s23, 0 }
  0x17   : > { %261 = sbr.rel (%p898_p5) target bundleno = 245 (0xf5), region = 48 }
  0x1c   : > { %v264_v1 = vld [vmem:[%s1425_s2 + $0x8] sm:$0xff]  ;;  %v1225_v2 = vmov 0.0   ;;  %v263_v3 = vld [vmem:[%s1425_s2] sm:$0xff]  ;;  %vm1226_vm0 = vmmov 0   ;;  %vm265_vm1 = vcmask 130048  }
  0x1d   : > { %992 = vmatprep.subr.mxu0 %v1225_v2  ;;  %996 = vmatprep.mubr.msk.f32.mxu0 %vm1226_vm0, %v1225_v2  ;;  %v262_v4 = vld [vmem:[%s1424_s1] sm:$0xff] }
  0x1e   : > { %993 = vmatpush3.msra.mxu0 %v264_v1  ;;  %v343_v18 = vld [vmem:[#allocation2] sm:$0x1]  ;;  %v352_v21 = vld [vmem:[#allocation3] sm:$0x1] }
  0x1f   : > { %994 = vmatprep.subr.mxu0 %v1225_v2 }
  0x20   : > { %995 = vmatpush3.msra.mxu0 %v263_v3 }
  0x21   : > { %997 = vmatmul.mubr.msk.f32.vlgmr.msra.gmra.mxu0 %vm265_vm1, %v262_v4 }
  0xe1   : > { %v335_v5 = vpop.f32.mrf.mxu0 }
  0xe2   : > { %v339_v6 = vmax.f32 %v335_v5, 0.0 }
  0xe3   : > { %v998_v7 = vpop.f32.mrf.mxu0 }
  0xe4   : > { %342 = vst [vmem:[#allocation4] sm:$0xff] %v339_v6  ;;  %v344_v8 = vrot.slane %v339_v6, 4  ;;  %v353_v9 = vmul.f32 %v339_v6, %v339_v6 }
  0xe6   : > { %v345_v10 = vadd.f32 %v344_v8, %v339_v6  ;;  %v354_v11 = vrot.slane %v353_v9, 4 }
  0xe8   : > { %v346_v12 = vrot.slane %v345_v10, 2  ;;  %v355_v13 = vadd.f32 %v354_v11, %v353_v9 }
  0xea   : > { %v347_v14 = vadd.f32 %v346_v12, %v345_v10  ;;  %v356_v15 = vrot.slane %v355_v13, 2 }
  0xec   : > { %v348_v16 = vrot.slane %v347_v14, 1  ;;  %v357_v17 = vadd.f32 %v356_v15, %v355_v13 }
  0xee   : > { %v349_v19 = vadd.f32 %v348_v16, %v347_v14  ;;  %v358_v20 = vrot.slane %v357_v17, 1 }
  0xf0   : > { %v350_v22 = vadd.f32 %v349_v19, %v343_v18  ;;  %v359_v23 = vadd.f32 %v358_v20, %v357_v17 }
  0xf2   : > { %351 = vst [vmem:[#allocation2] sm:$0x1] %v350_v22  ;;  %v360_v24 = vadd.f32 %v359_v23, %v352_v21 }
  0xf4   : > { %361 = vst [vmem:[#allocation3] sm:$0x1] %v360_v24 }
  0xf5 PF: > { %363 = sbr.rel (!%p251_p4) target bundleno = 519 (0x207), region = 52  ;;  %v451_v25 = vld [vmem:[%s1426_s3 + $0x78] sm:$0xff] (%p251_p4)  ;;  %v450_v26 = vld [vmem:[%s1426_s3 + $0x70] sm:$0xff] (%p251_p4)  ;;  %s364_s14 = sld [smem:[#allocation8]] (%p251_p4)  ;;  %v1227_v27 = vmov (%p251_p4), 0.0   ;;  %v449_v28 = vld [vmem:[%s1426_s3 + $0x68] sm:$0xff] (%p251_p4)  ;;  %v381_v51 = vlaneseq (%p251_p4) }
  0xf6   : > { %999 = vmatprep.subr.mxu0 (%p251_p4), %v451_v25  ;;  %1055 = vmatprep.subr.mxu1 (%p251_p4), %v1227_v27  ;;  %v448_v29 = vld [vmem:[%s1426_s3 + $0x60] sm:$0xff] (%p251_p4)  ;;  %v447_v30 = vld [vmem:[%s1426_s3 + $0x58] sm:$0xff] (%p251_p4)  ;;  %v446_v31 = vld [vmem:[%s1426_s3 + $0x50] sm:$0xff] (%p251_p4)  ;;  %vm1228_vm2 = vmmov (%p251_p4), 0  }
  0xf7   : > { %1000 = vmatpush3.msra.mxu0 (%p251_p4), %v451_v25  ;;  %1056 = vmatpush3.msra.mxu1 (%p251_p4), %v451_v25  ;;  %v445_v33 = vld [vmem:[%s1426_s3 + $0x48] sm:$0xff] (%p251_p4)  ;;  %v444_v34 = vld [vmem:[%s1426_s3 + $0x40] sm:$0xff] (%p251_p4)  ;;  %v443_v35 = vld [vmem:[%s1426_s3 + $0x38] sm:$0xff] (%p251_p4)  ;;  %v382_v52 = vshrl.u32 (%p251_p4), %v381_v51, 7  ;;  %v399_v54 = vand.u32 (%p251_p4), 127, %v381_v51 }
  0xf8   : > { %1001 = vmatprep.subr.mxu0 (%p251_p4), %v450_v26  ;;  %1057 = vmatprep.subr.mxu1 (%p251_p4), %v1227_v27  ;;  %v442_v36 = vld [vmem:[%s1426_s3 + $0x30] sm:$0xff] (%p251_p4)  ;;  %v441_v37 = vld [vmem:[%s1426_s3 + $0x28] sm:$0xff] (%p251_p4)  ;;  %v440_v38 = vld [vmem:[%s1426_s3 + $0x20] sm:$0xff] (%p251_p4) }
  0xf9   : > { %1002 = vmatpush3.msra.mxu0 (%p251_p4), %v450_v26  ;;  %1058 = vmatpush3.msra.mxu1 (%p251_p4), %v450_v26  ;;  %v368_v39 = vld [vmem:[#allocation2] sm:$0x1] (%p251_p4)  ;;  %v439_v42 = vld [vmem:[%s1426_s3 + $0x18] sm:$0xff] (%p251_p4)  ;;  %v438_v45 = vld [vmem:[%s1426_s3 + $0x10] sm:$0xff] (%p251_p4)  ;;  %v418_v55 = vsub.s32 (%p251_p4), 0, %v382_v52  ;;  %v383_v56 = vadd.s32 (%p251_p4), 8, %v382_v52  ;;  %vm400_vm3 = vcmp.eq.s32.totalorder (%p251_p4), %v382_v52, %v399_v54 }
  0xfa   : > { %1003 = vmatprep.subr.mxu0 %v449_v28  ;;  %1059 = vmatprep.subr.mxu1 %v1227_v27  ;;  %v437_v47 = vld [vmem:[%s1426_s3 + $0x8] sm:$0xff]  ;;  %v436_v49 = vld [vmem:[%s1426_s3] sm:$0xff]  ;;  %v384_v58 = vadd.s32 16, %v382_v52  ;;  %v385_v62 = vadd.s32 24, %v382_v52  ;;  %v386_v0 = vadd.s32 32, %v382_v52  ;;  %v387_v2 = vadd.s32 40, %v382_v52 }
  0xfb   : > { %1004 = vmatpush3.msra.mxu0 %v449_v28  ;;  %s365_s21 = scvt.s32.f32 %s364_s14  ;;  %1060 = vmatpush3.msra.mxu1 %v449_v28  ;;  %v372_v40 = vld [vmem:[#allocation3] sm:$0x1]  ;;  %v366_v53 = vld [vmem:[%s1427_s4] sm:$0x1]  ;;  %vm401_vm4 = vcmp.eq.s32.totalorder %v383_v56, %v399_v54  ;;  %v388_v3 = vadd.s32 48, %v382_v52  ;;  %v389_v4 = vadd.s32 56, %v382_v52 }
  0xfc   : > { %1005 = vmatprep.subr.mxu0 %v448_v29  ;;  %1061 = vmatprep.subr.mxu1 %v1227_v27  ;;  %v367_v60 = vld [vmem:[%s1427_s4 + $0x1] sm:$0x1]  ;;  %vm402_vm5 = vcmp.eq.s32.totalorder %v384_v58, %v399_v54  ;;  %vm403_vm6 = vcmp.eq.s32.totalorder %v385_v62, %v399_v54  ;;  %vm404_vm7 = vcmp.eq.s32.totalorder %v386_v0, %v399_v54  ;;  %v390_v5 = vadd.s32 64, %v382_v52  ;;  %v630_v13 = vld [vmem:[%s1428_s5] sm:$0x1] }
  0xfd   : > { %1006 = vmatpush3.msra.mxu0 %v448_v29  ;;  %v369_v32 = vstv %s365_s21  ;;  %1062 = vmatpush3.msra.mxu1 %v448_v29  ;;  %vm405_vm8 = vcmp.eq.s32.totalorder %v387_v2, %v399_v54  ;;  %vm406_vm9 = vcmp.eq.s32.totalorder %v388_v3, %v399_v54  ;;  %vm407_vm10 = vcmp.eq.s32.totalorder %v389_v4, %v399_v54 }
  0xfe   : > { %1007 = vmatprep.subr.mxu0 %v447_v30  ;;  %1168 = vrcp.f32 %v369_v32  ;;  %1063 = vmatprep.subr.mxu1 %v1227_v27  ;;  %v391_v6 = vadd.s32 72, %v382_v52  ;;  %vm408_vm11 = vcmp.eq.s32.totalorder %v390_v5, %v399_v54  ;;  %v392_v7 = vadd.s32 80, %v382_v52 }
  0xff   : > { %1008 = vmatpush3.msra.mxu0 %v447_v30  ;;  %1064 = vmatpush3.msra.mxu1 %v447_v30  ;;  %v393_v8 = vadd.s32 88, %v382_v52  ;;  %v394_v9 = vadd.s32 96, %v382_v52  ;;  %v395_v10 = vadd.s32 104, %v382_v52  ;;  %v396_v11 = vadd.s32 112, %v382_v52 }
 0x100   : > { %1009 = vmatprep.subr.mxu0 %v446_v31  ;;  %1065 = vmatprep.subr.mxu1 %v1227_v27  ;;  %vm409_vm12 = vcmp.eq.s32.totalorder %v391_v6, %v399_v54  ;;  %vm410_vm13 = vcmp.eq.s32.totalorder %v392_v7, %v399_v54  ;;  %v397_v12 = vadd.s32 120, %v382_v52 }
 0x101   : > { %1010 = vmatpush3.msra.mxu0 %v446_v31  ;;  %1066 = vmatpush3.msra.mxu1 %v446_v31  ;;  %vm411_vm14 = vcmp.eq.s32.totalorder %v393_v8, %v399_v54  ;;  %vm412_vm15 = vcmp.eq.s32.totalorder %v394_v9, %v399_v54  ;;  %vm413_vm0 = vcmp.eq.s32.totalorder %v395_v10, %v399_v54 }
 0x102   : > { %1011 = vmatprep.subr.mxu0 %v445_v33  ;;  %1067 = vmatprep.subr.mxu1 %v1227_v27  ;;  %vm414_vm1 = vcmp.eq.s32.totalorder %v396_v11, %v399_v54 }
 0x103   : > { %1012 = vmatpush3.msra.mxu0 %v445_v33  ;;  %1068 = vmatpush3.msra.mxu1 %v445_v33 }
 0x104   : > { %1013 = vmatprep.subr.mxu0 %v444_v34  ;;  %1069 = vmatprep.subr.mxu1 %v1227_v27 }
 0x105   : > { %1014 = vmatpush3.msra.mxu0 %v444_v34  ;;  %1070 = vmatpush3.msra.mxu1 %v444_v34 }
 0x106   : > { %1015 = vmatprep.subr.mxu0 %v443_v35  ;;  %1071 = vmatprep.subr.mxu1 %v1227_v27 }
 0x107   : > { %1016 = vmatpush3.msra.mxu0 %v443_v35  ;;  %1072 = vmatpush3.msra.mxu1 %v443_v35 }
 0x108   : > { %1017 = vmatprep.subr.mxu0 %v442_v36  ;;  %1073 = vmatprep.subr.mxu1 %v1227_v27 }
 0x109   : > { %1018 = vmatpush3.msra.mxu0 %v442_v36  ;;  %1074 = vmatpush3.msra.mxu1 %v442_v36 }
 0x10a   : > { %1019 = vmatprep.subr.mxu0 %v441_v37  ;;  %1075 = vmatprep.subr.mxu1 %v1227_v27 }
 0x10b   : > { %v1169_v41 = vpop.eup %1168  ;;  %1020 = vmatpush3.msra.mxu0 %v441_v37  ;;  %1076 = vmatpush3.msra.mxu1 %v441_v37 }
 0x10c   : > { %1021 = vmatprep.subr.mxu0 %v440_v38  ;;  %v371_v43 = vmul.f32 %v1169_v41, %v368_v39  ;;  %v373_v44 = vmul.f32 %v1169_v41, %v372_v40  ;;  %1077 = vmatprep.subr.mxu1 %v1227_v27 }
 0x10d   : > { %1022 = vmatpush3.msra.mxu0 %v440_v38  ;;  %1078 = vmatpush3.msra.mxu1 %v440_v38 }
 0x10e   : > { %1023 = vmatprep.subr.mxu0 %v439_v42  ;;  %v374_v46 = vmul.f32 %v371_v43, %v371_v43  ;;  %1079 = vmatprep.subr.mxu1 %v1227_v27 }
 0x10f   : > { %1024 = vmatpush3.msra.mxu0 %v439_v42  ;;  %1080 = vmatpush3.msra.mxu1 %v439_v42 }
 0x110   : > { %1025 = vmatprep.subr.mxu0 %v438_v45  ;;  %v375_v48 = vsub.f32 %v373_v44, %v374_v46  ;;  %1081 = vmatprep.subr.mxu1 %v1227_v27 }
 0x111   : > { %1026 = vmatpush3.msra.mxu0 %v438_v45  ;;  %1082 = vmatpush3.msra.mxu1 %v438_v45 }
 0x112   : > { %1027 = vmatprep.subr.mxu0 %v437_v47  ;;  %v376_v50 = vadd.f32 1e-05, %v375_v48  ;;  %1083 = vmatprep.subr.mxu1 %v1227_v27 }
 0x113   : > { %1028 = vmatpush3.msra.mxu0 %v437_v47  ;;  %1084 = vmatpush3.msra.mxu1 %v437_v47 }
 0x114   : > { %1029 = vmatprep.subr.mxu0 %v436_v49  ;;  %1170 = vrsqrt.f32 %v376_v50  ;;  %1085 = vmatprep.subr.mxu1 %v1227_v27 }
 0x115   : > { %1030 = vmatpush3.msra.mxu0 %v436_v49  ;;  %1086 = vmatpush3.msra.mxu1 %v436_v49 }
 0x116   : > { %1087 = vmatprep.mubr.msk.f32.mxu1 %vm1228_vm2, %v1227_v27  ;;  %vm415_vm2 = vcmp.eq.s32.totalorder %v397_v12, %v399_v54 }
 0x121   : > { %v1171_v57 = vpop.eup %1170 }
 0x122   : > { %v378_v59 = vmul.f32 %v1171_v57, %v366_v53 }
 0x124   : > { %v419_v61 = vrot.slane %v378_v59, %v418_v55  ;;  %v379_v63 = vmul.f32 %v378_v59, %v371_v43 }
 0x126   : > { %1031 = vmatprep.mubr.msk.f32.mxu0 %vm400_vm3, %v419_v61  ;;  %v380_v1 = vsub.f32 %v367_v60, %v379_v63  ;;  %vm597_vm3 = vcmask 64512  }
 0x127   : > { %1032 = vmatmul.mubr.msk.f32.vlgmr.msra.gmra.mxu0 %vm401_vm4, %v419_v61  ;;  %vm701_vm4 = vcmask 57344  }
 0x128   : > { %1034 = vmatprep.mubr.msk.f32.mxu0 %vm402_vm5, %v419_v61  ;;  %1088 = vmatmul.mubr.f32.vlgmr.msra.gmra.mxu1 %v380_v1 }
 0x12b   : > { %1035 = vmatmul.mubr.msk.f32.gmra.mxu0 %vm403_vm6, %v419_v61 }
 0x12c   : > { %1037 = vmatprep.mubr.msk.f32.mxu0 %vm404_vm7, %v419_v61 }
 0x12f   : > { %1038 = vmatmul.mubr.msk.f32.gmra.mxu0 %vm405_vm8, %v419_v61 }
 0x130   : > { %1040 = vmatprep.mubr.msk.f32.mxu0 %vm406_vm9, %v419_v61 }
 0x133   : > { %1041 = vmatmul.mubr.msk.f32.gmra.mxu0 %vm407_vm10, %v419_v61 }
 0x134   : > { %1043 = vmatprep.mubr.msk.f32.mxu0 %vm408_vm11, %v419_v61 }
 0x137   : > { %1044 = vmatmul.mubr.msk.f32.gmra.mxu0 %vm409_vm12, %v419_v61 }
 0x138   : > { %1046 = vmatprep.mubr.msk.f32.mxu0 %vm410_vm13, %v419_v61 }
 0x13b   : > { %1047 = vmatmul.mubr.msk.f32.gmra.mxu0 %vm411_vm14, %v419_v61 }
 0x13c   : > { %1049 = vmatprep.mubr.msk.f32.mxu0 %vm412_vm15, %v419_v61 }
 0x13f   : > { %1050 = vmatmul.mubr.msk.f32.gmra.mxu0 %vm413_vm0, %v419_v61 }
 0x140   : > { %1052 = vmatprep.mubr.msk.f32.mxu0 %vm414_vm1, %v419_v61 }
 0x143   : > { %1053 = vmatmul.mubr.msk.f32.gmra.mxu0 %vm415_vm2, %v419_v61 }
 0x1e7   : > { %v1033_v14 = vpop.f32.mrf.mxu0 }
 0x1e8   : > { %599 = vst.msk [vmem:[#allocation5 + $0x8] sm:$0xff] %vm597_vm3, %v1033_v14  ;;  %v697_v15 = vpop.f32.mrf.mxu1 }
 0x1e9   : > { %v518_v16 = vpop.f32.mrf.mxu0  ;;  %v698_v17 = vadd.f32 %v697_v15, %v630_v13 }
 0x1ea   : > { %598 = vst.msk [vmem:[#allocation5] sm:$0xff] %vm597_vm3, %v518_v16  ;;  %v1089_v18 = vpop.f32.mrf.mxu1 }
 0x1eb   : > { %v1036_v19 = vpop.f32.mrf.mxu0  ;;  %702 = vst.msk [vmem:[#allocation6] sm:$0x1] %vm701_vm4, %v698_v17 }
 0x1ec   : > { %601 = vst.msk [vmem:[#allocation5 + $0x18] sm:$0xff] %vm597_vm3, %v1036_v19 }
 0x1ed   : > { %v528_v20 = vpop.f32.mrf.mxu0 }
 0x1ee   : > { %600 = vst.msk [vmem:[#allocation5 + $0x10] sm:$0xff] %vm597_vm3, %v528_v20 }
 0x1ef   : > { %v1039_v21 = vpop.f32.mrf.mxu0 }
 0x1f0   : > { %603 = vst.msk [vmem:[#allocation5 + $0x28] sm:$0xff] %vm597_vm3, %v1039_v21 }
 0x1f1   : > { %v538_v22 = vpop.f32.mrf.mxu0 }
 0x1f2   : > { %602 = vst.msk [vmem:[#allocation5 + $0x20] sm:$0xff] %vm597_vm3, %v538_v22 }
 0x1f3   : > { %v1042_v23 = vpop.f32.mrf.mxu0 }
 0x1f4   : > { %605 = vst.msk [vmem:[#allocation5 + $0x38] sm:$0xff] %vm597_vm3, %v1042_v23 }
 0x1f5   : > { %v548_v24 = vpop.f32.mrf.mxu0 }
 0x1f6   : > { %604 = vst.msk [vmem:[#allocation5 + $0x30] sm:$0xff] %vm597_vm3, %v548_v24 }
 0x1f7   : > { %v1045_v25 = vpop.f32.mrf.mxu0 }
 0x1f8   : > { %607 = vst.msk [vmem:[#allocation5 + $0x48] sm:$0xff] %vm597_vm3, %v1045_v25 }
 0x1f9   : > { %v558_v26 = vpop.f32.mrf.mxu0 }
 0x1fa   : > { %606 = vst.msk [vmem:[#allocation5 + $0x40] sm:$0xff] %vm597_vm3, %v558_v26 }
 0x1fb   : > { %v1048_v27 = vpop.f32.mrf.mxu0 }
 0x1fc   : > { %609 = vst.msk [vmem:[#allocation5 + $0x58] sm:$0xff] %vm597_vm3, %v1048_v27 }
 0x1fd   : > { %v568_v28 = vpop.f32.mrf.mxu0 }
 0x1fe   : > { %608 = vst.msk [vmem:[#allocation5 + $0x50] sm:$0xff] %vm597_vm3, %v568_v28 }
 0x1ff   : > { %v1051_v29 = vpop.f32.mrf.mxu0 }
 0x200   : > { %611 = vst.msk [vmem:[#allocation5 + $0x68] sm:$0xff] %vm597_vm3, %v1051_v29 }
 0x201   : > { %v578_v30 = vpop.f32.mrf.mxu0 }
 0x202   : > { %610 = vst.msk [vmem:[#allocation5 + $0x60] sm:$0xff] %vm597_vm3, %v578_v30 }
 0x203   : > { %v1054_v31 = vpop.f32.mrf.mxu0 }
 0x204   : > { %613 = vst.msk [vmem:[#allocation5 + $0x78] sm:$0xff] %vm597_vm3, %v1054_v31 }
 0x205   : > { %v588_v32 = vpop.f32.mrf.mxu0 }
 0x206   : > { %612 = vst.msk [vmem:[#allocation5 + $0x70] sm:$0xff] %vm597_vm3, %v588_v32 }
 0x207 PF: > { %p916_p6 = scmp.ne.s32.totalorder %s1214_s23, 1 }
 0x209   : > { %706 = sbr.rel (%p916_p6) target bundleno = 755 (0x2f3), region = 56 }
 0x20e   : > { %v725_v33 = vld [vmem:[#allocation5 + $0x78] sm:$0xff]  ;;  %v1229_v34 = vmov 0.0   ;;  %v724_v35 = vld [vmem:[#allocation5 + $0x70] sm:$0xff]  ;;  %vm1230_vm5 = vmmov 0   ;;  %v723_v36 = vld [vmem:[#allocation5 + $0x68] sm:$0xff]  ;;  %vm803_vm6 = vcmask 64512  }
 0x20f   : > { %1090 = vmatprep.subr.mxu0 %v1229_v34  ;;  %1122 = vmatprep.mubr.msk.f32.mxu0 %vm1230_vm5, %v1229_v34  ;;  %v722_v37 = vld [vmem:[#allocation5 + $0x60] sm:$0xff]  ;;  %v721_v38 = vld [vmem:[#allocation5 + $0x58] sm:$0xff]  ;;  %v720_v39 = vld [vmem:[#allocation5 + $0x50] sm:$0xff] }
 0x210   : > { %1091 = vmatpush3.msra.mxu0 %v725_v33  ;;  %v719_v40 = vld [vmem:[#allocation5 + $0x48] sm:$0xff]  ;;  %v718_v41 = vld [vmem:[#allocation5 + $0x40] sm:$0xff]  ;;  %v717_v42 = vld [vmem:[#allocation5 + $0x38] sm:$0xff] }
 0x211   : > { %1092 = vmatprep.subr.mxu0 %v1229_v34  ;;  %v716_v43 = vld [vmem:[#allocation5 + $0x30] sm:$0xff]  ;;  %v715_v44 = vld [vmem:[#allocation5 + $0x28] sm:$0xff]  ;;  %v714_v45 = vld [vmem:[#allocation5 + $0x20] sm:$0xff] }
 0x212   : > { %1093 = vmatpush3.msra.mxu0 %v724_v35  ;;  %v713_v46 = vld [vmem:[#allocation5 + $0x18] sm:$0xff]  ;;  %v712_v47 = vld [vmem:[#allocation5 + $0x10] sm:$0xff]  ;;  %v711_v48 = vld [vmem:[#allocation5 + $0x8] sm:$0xff] }
 0x213   : > { %1094 = vmatprep.subr.mxu0 %v1229_v34  ;;  %v710_v49 = vld [vmem:[#allocation5] sm:$0xff]  ;;  %v709_v50 = vld [vmem:[#allocation4] sm:$0xff] }
 0x214   : > { %1095 = vmatpush3.msra.mxu0 %v723_v36  ;;  %v917_v51 = vld [vmem:[#allocation6] ss:$0 sm:$0xff] }
 0x215   : > { %1096 = vmatprep.subr.mxu0 %v1229_v34 }
 0x216   : > { %1097 = vmatpush3.msra.mxu0 %v722_v37 }
 0x217   : > { %1098 = vmatprep.subr.mxu0 %v1229_v34 }
 0x218   : > { %1099 = vmatpush3.msra.mxu0 %v721_v38 }
 0x219   : > { %1100 = vmatprep.subr.mxu0 %v1229_v34 }
 0x21a   : > { %1101 = vmatpush3.msra.mxu0 %v720_v39 }
 0x21b   : > { %1102 = vmatprep.subr.mxu0 %v1229_v34 }
 0x21c   : > { %1103 = vmatpush3.msra.mxu0 %v719_v40 }
 0x21d   : > { %1104 = vmatprep.subr.mxu0 %v1229_v34 }
 0x21e   : > { %1105 = vmatpush3.msra.mxu0 %v718_v41 }
 0x21f   : > { %1106 = vmatprep.subr.mxu0 %v1229_v34 }
 0x220   : > { %1107 = vmatpush3.msra.mxu0 %v717_v42 }
 0x221   : > { %1108 = vmatprep.subr.mxu0 %v1229_v34 }
 0x222   : > { %1109 = vmatpush3.msra.mxu0 %v716_v43 }
 0x223   : > { %1110 = vmatprep.subr.mxu0 %v1229_v34 }
 0x224   : > { %1111 = vmatpush3.msra.mxu0 %v715_v44 }
 0x225   : > { %1112 = vmatprep.subr.mxu0 %v1229_v34 }
 0x226   : > { %1113 = vmatpush3.msra.mxu0 %v714_v45 }
 0x227   : > { %1114 = vmatprep.subr.mxu0 %v1229_v34 }
 0x228   : > { %1115 = vmatpush3.msra.mxu0 %v713_v46 }
 0x229   : > { %1116 = vmatprep.subr.mxu0 %v1229_v34 }
 0x22a   : > { %1117 = vmatpush3.msra.mxu0 %v712_v47 }
 0x22b   : > { %1118 = vmatprep.subr.mxu0 %v1229_v34 }
 0x22c   : > { %1119 = vmatpush3.msra.mxu0 %v711_v48 }
 0x22d   : > { %1120 = vmatprep.subr.mxu0 %v1229_v34 }
 0x22e   : > { %1121 = vmatpush3.msra.mxu0 %v710_v49 }
 0x22f   : > { %1123 = vmatmul.mubr.f32.vlgmr.msra.gmra.mxu0 %v709_v50 }
 0x2ef   : > { %v799_v52 = vpop.f32.mrf.mxu0 }
 0x2f0   : > { %v800_v53 = vadd.f32 %v917_v51, %v799_v52 }
 0x2f1   : > { %v1124_v54 = vpop.f32.mrf.mxu0 }
 0x2f2   : > { %804 = vst.msk [vmem:[#allocation9] sm:$0xff] %vm803_vm6, %v800_v53 }
 0x2f3 PF: > { %p1400_p7 = scmp.eq.s32.totalorder %s891_s0, 1  ;;  %s1231_s12 = smov [#allocation9]  }
 0x2f4   : > { %s820_s13 = sshll.u32 %s1231_s12, 4  ;;  %s821_s13 = int_to_ptr.vmem [resolvable:$true] %s820_s13 }
 0x2f5   : > { %s1172_s14 = scalar_lea.vmem %s821_s13, 128  ;;  %s1178_s15 = scalar_lea.vmem %s821_s13, 256 }
 0x2f6   : > { %p1173_p8 = scmp.ne.s32.totalorder %s821_s13, %s1172_s14  ;;  %p1179_p11 = scmp.lt.s32.totalorder %s821_s13, %s821_s13 }
 0x2f7   : > { %p1180_p12 = scmp.lt.s32.totalorder %s1178_s15, %s1172_s14 }
 0x2f8   : > { %p1174_p9 = pnand %p1173_p8, %p1400_p7 }
 0x2f9   : > { %p1181_p13 = por %p1180_p12, %p1179_p11 }
 0x2fa   : > { %p1175_p10 = pneg %p1174_p9 }
 0x2fc   : > { %p1182_p0 = pnand %p1181_p13, %p1175_p10 }
 0x2fe   : > { %1185 = shalt.err (!%p1182_p0)
}
 0x2ff   : > { %1126 = dma.vmem_to_hbm [thread:$0]  (%p1400_p7), %s821_s13, 128, %s1429_s6, [#allocation10]  }
 0x300 PF: > { %p1134_p1 = scmp.ge.s32.totalorder %s1222_s25, 2  ;;  %p1135_p2 = scmp.eq.s32.totalorder %s892_s26, 1 }
 0x302   : > { %p1130_p3 = pnand %p1135_p2, %p1134_p1 }
 0x304   : > { %p1131_p4 = pneg %p1130_p3 }
 0x306   : > { %1209 = dma.done.wait (%p1131_p4), [#allocation10], 128  }
 0x307   : > { %1211 = vsyncadd (%p1131_p4), [#allocation10], 4294967168  ;;  %s20_s25 = sadd.s32 1, %s1222_s25   ;;  %s1431_s23 = smov %s1218_s24 }
 0x308   : > { %p17_p5 = scmp.ge.s32.totalorder %s20_s25, 4   ;;  %s1432_s24 = smov %s1434_s27 }
 0x30a   :  { %19 = sbr.rel (!%p17_p5) target bundleno = 5 (0x5), region = 93 }
 0x30f   :  { %838 = vsyncpa [#allocation10], 1 }
 0x310   :  { %840 = vsyncpa [#allocation10 + $0x1], 1 }

</bundles_post_ra>
